<compile_context>
chip_gen: v5e
topology: v5e:2x2
jax: 0.10.0
libtpu: 0.0.40
codegen_flags: <defaults>
</compile_context>

<pallas_src>
import functools
import math

import jax
import jax.numpy as jnp
import numpy as np
from jax import lax
from jax.experimental import pallas as pl
from jax.experimental.pallas import tpu as pltpu


# ---------------------------------------------------------------------------
# Per-generation configuration
# ---------------------------------------------------------------------------

@functools.lru_cache(maxsize=None)
def _chip_config():
    """Tile/VMEM budget per TPU generation (device_kind probe is robust across
    jax versions; pltpu.get_tpu_info field names vary)."""
    kind = ""
    try:
        kind = jax.devices()[0].device_kind.lower()
    except Exception:
        pass
    if "v7" in kind or "7x" in kind:
        # 64 MiB VMEM/TC, 3.2 TB/s HBM, 2 TCs -> bigger blocks + core-parallel.
        return {"tile_bytes": 6 << 20, "f32_cap_bytes": 8 << 20,
                "vmem_limit": 56 << 20, "core_parallel": True}
    if "v6" in kind:
        return {"tile_bytes": 4 << 20, "f32_cap_bytes": 16 << 20,
                "vmem_limit": 96 << 20, "core_parallel": False}
    if "v5p" in kind or "v4" in kind:
        return {"tile_bytes": 4 << 20, "f32_cap_bytes": 16 << 20,
                "vmem_limit": 96 << 20, "core_parallel": False}
    if "v5" in kind:
        # v5e: default scoped VMEM is only 16 MiB of 128 physical -> raise it.
        return {"tile_bytes": 3 << 20, "f32_cap_bytes": 12 << 20,
                "vmem_limit": 64 << 20, "core_parallel": False}
    # Unknown chip: conservative blocks, compiler-default VMEM limit.
    return {"tile_bytes": 2 << 20, "f32_cap_bytes": 8 << 20,
            "vmem_limit": None, "core_parallel": False}


def _block_elems(dtype):
    """Per-block element budget: dtype-aware, capped so the in-kernel f32
    upcast temporaries stay within the generation's VMEM headroom."""
    cfg = _chip_config()
    itemsize = jnp.dtype(dtype).itemsize
    elems = cfg["tile_bytes"] // itemsize
    elems = min(elems, cfg["f32_cap_bytes"] // 4)
    return max(int(elems), 1)


def _compiler_params(n_axes):
    cfg = _chip_config()
    if cfg["core_parallel"]:
        sem = (pltpu.CORE_PARALLEL,) + ("parallel",) * (n_axes - 1)
    else:
        sem = ("parallel",) * n_axes
    return pltpu.CompilerParams(dimension_semantics=sem,
                                vmem_limit_bytes=cfg["vmem_limit"])


def _pick_row_tile(n_rows, row_elems, block_elems):
    rows = block_elems // max(row_elems, 1)
    if rows >= n_rows:
        return n_rows                      # full extent (always legal)
    rows = (rows // 8) * 8                 # sublane multiple
    if rows == 0:
        rows = min(8, n_rows)
    return rows


def _pick_lane_tile(n_lanes, col_elems, block_elems):
    lanes = block_elems // max(col_elems, 1)
    if lanes >= n_lanes:
        return n_lanes                     # full extent (always legal)
    lanes = (lanes // 128) * 128           # lane multiple -> unmasked vst
    if lanes == 0:
        lanes = min(128, n_lanes)
    return lanes


# ---------------------------------------------------------------------------
# Kernels
# ---------------------------------------------------------------------------

def _ln_channels_last_kernel(x_ref, w_ref, b_ref, o_ref, *, eps):
    """x_ref/o_ref: (TILE_N, C) row-tile of flattened tokens; w/b: (1, C).
    Used when C is a multiple of 128 (already lane-dense)."""
    x = x_ref[...].astype(jnp.float32)
    w = w_ref[...].astype(jnp.float32)
    b = b_ref[...].astype(jnp.float32)
    inv_c = 1.0 / x.shape[-1]
    mean = jnp.sum(x, axis=-1, keepdims=True) * inv_c
    d = x - mean
    var = jnp.sum(d * d, axis=-1, keepdims=True) * inv_c     # two-pass variance
    inv_std = lax.rsqrt(var + eps)                            # EUP slot
    o_ref[...] = (d * inv_std * w + b).astype(o_ref.dtype)


def _ln_folded_kernel(x_ref, w_ref, b_ref, seg_ref, segt_ref, o_ref, *, eps, inv_c):
    """Lane-dense path for C not a multiple of 128.

    x_ref/o_ref: (TILE_N, k*C) where each row holds k consecutive tokens, so
    the lane width k*C is a multiple of 128 (unmasked stores).  Per-token
    reductions and broadcast-back are done with tiny block-diagonal ones
    matrices on the otherwise idle MXU:
      seg : (k*C, k)  seg[i, j]  = 1 iff i // C == j
      segt: (k, k*C)  transpose of seg
    w/b: (1, k*C) = weight/bias tiled k times.
    """
    x = x_ref[...].astype(jnp.float32)
    w = w_ref[...].astype(jnp.float32)
    b = b_ref[...].astype(jnp.float32)
    seg = seg_ref[...]
    segt = segt_ref[...]

    sums = jnp.dot(x, seg, preferred_element_type=jnp.float32)        # (rows, k)
    mean = sums * inv_c
    mean_b = jnp.dot(mean, segt, preferred_element_type=jnp.float32)  # (rows, k*C)
    d = x - mean_b
    var = jnp.dot(d * d, seg, preferred_element_type=jnp.float32) * inv_c
    inv_std = lax.rsqrt(var + eps)
    inv_b = jnp.dot(inv_std, segt, preferred_element_type=jnp.float32)
    o_ref[...] = (d * inv_b * w + b).astype(o_ref.dtype)


def _ln_channels_first_kernel(x_ref, w_ref, b_ref, o_ref, *, eps):
    """x_ref/o_ref: (C, TILE_HW) — channels on sublanes, spatial on lanes
    (batch dim squeezed away).  w/b: (C, 1)."""
    x = x_ref[...].astype(jnp.float32)
    w = w_ref[...].astype(jnp.float32)
    b = b_ref[...].astype(jnp.float32)
    inv_c = 1.0 / x.shape[0]
    mean = jnp.sum(x, axis=0, keepdims=True) * inv_c          # cross-sublane (XLU)
    d = x - mean
    var = jnp.sum(d * d, axis=0, keepdims=True) * inv_c
    inv_std = lax.rsqrt(var + eps)
    o_ref[...] = (d * inv_std * w + b).astype(o_ref.dtype)


# ---------------------------------------------------------------------------
# Wrappers
# ---------------------------------------------------------------------------

def layer_norm_channels_last(x, weight, bias, eps=1e-6):
    """F.layer_norm over the last dim. x: (..., C)."""
    orig_shape = x.shape
    C = orig_shape[-1]
    N = int(np.prod(orig_shape[:-1])) if len(orig_shape) > 1 else 1
    x2 = x.reshape(N, C)
    blk = _block_elems(x.dtype)

    if C % 128 == 0:
        # Already lane-dense: stream (tile_n, C) row tiles.
        tile_n = _pick_row_tile(N, C, blk)
        grid = (pl.cdiv(N, tile_n),)
        out = pl.pallas_call(
            functools.partial(_ln_channels_last_kernel, eps=float(eps)),
            out_shape=jax.ShapeDtypeStruct((N, C), x.dtype),
            grid_spec=pltpu.PrefetchScalarGridSpec(
                num_scalar_prefetch=0,
                grid=grid,
                in_specs=[
                    pl.BlockSpec((tile_n, C), lambda i: (i, 0)),
                    pl.BlockSpec((1, C), lambda i: (0, 0)),   # resident weight
                    pl.BlockSpec((1, C), lambda i: (0, 0)),   # resident bias
                ],
                out_specs=pl.BlockSpec((tile_n, C), lambda i: (i, 0)),
            ),
            compiler_params=_compiler_params(1),
        )(x2, weight.reshape(1, C), bias.reshape(1, C))
        return out.reshape(orig_shape)

    # C not a multiple of 128: fold k tokens per row so lanes stay dense.
    k = 128 // math.gcd(C, 128)
    kC = k * C
    n_pad = ((N + k - 1) // k) * k
    if n_pad != N:
        x2 = jnp.pad(x2, ((0, n_pad - N), (0, 0)))
    nf = n_pad // k
    xf = x2.reshape(nf, kC)

    w_t = jnp.tile(weight.reshape(1, C), (1, k))                        # (1, k*C)
    b_t = jnp.tile(bias.reshape(1, C), (1, k))                          # (1, k*C)
    seg_ids = jnp.arange(kC, dtype=jnp.int32) // C
    seg = (seg_ids[:, None] == jnp.arange(k, dtype=jnp.int32)[None, :]
           ).astype(jnp.float32)                                        # (k*C, k)
    segt = jnp.transpose(seg)                                           # (k, k*C)

    tile_n = _pick_row_tile(nf, kC, blk)
    grid = (pl.cdiv(nf, tile_n),)
    out = pl.pallas_call(
        functools.partial(_ln_folded_kernel, eps=float(eps), inv_c=1.0 / C),
        out_shape=jax.ShapeDtypeStruct((nf, kC), x.dtype),
        grid_spec=pltpu.PrefetchScalarGridSpec(
            num_scalar_prefetch=0,
            grid=grid,
            in_specs=[
                pl.BlockSpec((tile_n, kC), lambda i: (i, 0)),
                pl.BlockSpec((1, kC), lambda i: (0, 0)),      # resident weight
                pl.BlockSpec((1, kC), lambda i: (0, 0)),      # resident bias
                pl.BlockSpec((kC, k), lambda i: (0, 0)),      # resident seg
                pl.BlockSpec((k, kC), lambda i: (0, 0)),      # resident seg^T
            ],
            out_specs=pl.BlockSpec((tile_n, kC), lambda i: (i, 0)),
        ),
        compiler_params=_compiler_params(1),
    )(xf, w_t, b_t, seg, segt)

    out = out.reshape(n_pad, C)
    if n_pad != N:
        out = out[:N]
    return out.reshape(orig_shape)


def layer_norm_channels_first(x, weight, bias, eps=1e-6):
    """Normalize over the channel dim. x: (B, C, H, W)."""
    B, C, H, W = x.shape
    HW = H * W
    x3 = x.reshape(B, C, HW)
    blk = _block_elems(x.dtype)

    tile_hw = _pick_lane_tile(HW, C, blk)
    grid = (B, pl.cdiv(HW, tile_hw))

    out = pl.pallas_call(
        functools.partial(_ln_channels_first_kernel, eps=float(eps)),
        out_shape=jax.ShapeDtypeStruct((B, C, HW), x.dtype),
        grid_spec=pltpu.PrefetchScalarGridSpec(
            num_scalar_prefetch=0,
            grid=grid,
            in_specs=[
                pl.BlockSpec((pl.Squeezed(), C, tile_hw), lambda b, j: (b, 0, j)),
                pl.BlockSpec((C, 1), lambda b, j: (0, 0)),    # resident weight
                pl.BlockSpec((C, 1), lambda b, j: (0, 0)),    # resident bias
            ],
            out_specs=pl.BlockSpec((pl.Squeezed(), C, tile_hw),
                                   lambda b, j: (b, 0, j)),
        ),
        compiler_params=_compiler_params(2),
    )(x3, weight.reshape(C, 1), bias.reshape(C, 1))
    return out.reshape(B, C, H, W)


def layer_norm(x, weight, bias, eps=1e-6, data_format="channels_last"):
    """Matches LayerNorm.forward from DDPM_ConvNeXt.py."""
    if data_format == "channels_last":
        return layer_norm_channels_last(x, weight, bias, eps)
    elif data_format == "channels_first":
        return layer_norm_channels_first(x, weight, bias, eps)
    raise NotImplementedError(data_format)


# ---------------------------------------------------------------------------
# Pure-JAX reference (mirrors the PyTorch forward)
# ---------------------------------------------------------------------------

def layer_norm_ref(x, weight, bias, eps=1e-6, data_format="channels_last"):
    if data_format == "channels_last":
        mean = x.mean(-1, keepdims=True)
        var = ((x - mean) ** 2).mean(-1, keepdims=True)
        return (x - mean) / jnp.sqrt(var + eps) * weight + bias
    mean = x.mean(1, keepdims=True)
    var = ((x - mean) ** 2).mean(1, keepdims=True)
    xn = (x - mean) / jnp.sqrt(var + eps)
    return weight[None, :, None, None] * xn + bias[None, :, None, None]


if __name__ == "__main__":
    key = jax.random.PRNGKey(0)
    ks = jax.random.split(key, 8)

    # --- channels_last, small C=4 (folded lane-dense path) ---
    x1 = 1.3 * jax.random.normal(ks[0], (2, 16, 16, 4), jnp.float32) + 0.2
    w4 = 1.0 + 0.1 * jax.random.normal(ks[1], (4,), jnp.float32)
    b4 = 0.1 * jax.random.normal(ks[2], (4,), jnp.float32)
    o1 = jax.block_until_ready(layer_norm(x1, w4, b4, data_format="channels_last"))
    r1 = layer_norm_ref(x1, w4, b4, data_format="channels_last")
    np.testing.assert_allclose(np.asarray(o1), np.asarray(r1), rtol=1e-4, atol=1e-5)

    # --- channels_last, C=128 (plain lane-dense path) ---
    x2 = jax.random.normal(ks[3], (2, 8, 8, 128), jnp.float32) - 0.4
    w128 = 1.0 + 0.1 * jax.random.normal(ks[4], (128,), jnp.float32)
    b128 = 0.1 * jax.random.normal(ks[5], (128,), jnp.float32)
    o2 = jax.block_until_ready(layer_norm(x2, w128, b128, data_format="channels_last"))
    r2 = layer_norm_ref(x2, w128, b128, data_format="channels_last")
    np.testing.assert_allclose(np.asarray(o2), np.asarray(r2), rtol=1e-4, atol=1e-5)

    # --- channels_last, C=4 with token count not a multiple of the fold factor ---
    x3 = jax.random.normal(ks[6], (3, 5, 7, 4), jnp.float32)
    o3 = jax.block_until_ready(layer_norm(x3, w4, b4, data_format="channels_last"))
    r3 = layer_norm_ref(x3, w4, b4, data_format="channels_last")
    np.testing.assert_allclose(np.asarray(o3), np.asarray(r3), rtol=1e-4, atol=1e-5)

    # --- channels_first, (B, C, H, W) with C=4 ---
    x4 = jax.random.normal(ks[7], (2, 4, 16, 16), jnp.float32) + 0.3
    o4 = jax.block_until_ready(layer_norm(x4, w4, b4, data_format="channels_first"))
    r4 = layer_norm_ref(x4, w4, b4, data_format="channels_first")
    np.testing.assert_allclose(np.asarray(o4), np.asarray(r4), rtol=1e-4, atol=1e-5)

    # --- channels_first, C=128 ---
    x5 = 0.7 * jax.random.normal(ks[0], (2, 128, 16, 16), jnp.float32)
    o5 = jax.block_until_ready(layer_norm(x5, w128, b128, data_format="channels_first"))
    r5 = layer_norm_ref(x5, w128, b128, data_format="channels_first")
    np.testing.assert_allclose(np.asarray(o5), np.asarray(r5), rtol=1e-4, atol=1e-5)

    print("KERNEL_OK")
</pallas_src>

<mosaic_0001>
module attributes {stable_mosaic.version = 11 : i64} {
  func.func @_ln_folded_kernel(%arg0: i32, %arg1: memref<16x128xf32, #tpu.memory_space<vmem>>, %arg2: memref<1x128xf32, #tpu.memory_space<vmem>>, %arg3: memref<1x128xf32, #tpu.memory_space<vmem>>, %arg4: memref<128x32xf32, #tpu.memory_space<vmem>>, %arg5: memref<32x128xf32, #tpu.memory_space<vmem>>, %arg6: memref<16x128xf32, #tpu.memory_space<vmem>>) attributes {dimension_semantics = [#tpu.dimension_semantics<parallel>], iteration_bounds = array<i64: 1>, scalar_prefetch = 0 : i64, scratch_operands = 0 : i64, tpu.core_type = #tpu.core_type<tc>, window_params = [{transform_indices = @transform_0, window_bounds = array<i64: 16, 128>}, {pipeline_mode = #tpu.pipeline_mode<synchronous>, transform_indices = @transform_1, window_bounds = array<i64: 1, 128>}, {pipeline_mode = #tpu.pipeline_mode<synchronous>, transform_indices = @transform_2, window_bounds = array<i64: 1, 128>}, {pipeline_mode = #tpu.pipeline_mode<synchronous>, transform_indices = @transform_3, window_bounds = array<i64: 128, 32>}, {pipeline_mode = #tpu.pipeline_mode<synchronous>, transform_indices = @transform_4, window_bounds = array<i64: 32, 128>}, {transform_indices = @transform_5, window_bounds = array<i64: 16, 128>}]} {
    %c0 = arith.constant 0 : index
    %c0_0 = arith.constant 0 : index
    %0 = vector.load %arg1[%c0, %c0_0] : memref<16x128xf32, #tpu.memory_space<vmem>>, vector<16x128xf32>
    %c0_1 = arith.constant 0 : index
    %c0_2 = arith.constant 0 : index
    %1 = vector.load %arg2[%c0_1, %c0_2] : memref<1x128xf32, #tpu.memory_space<vmem>>, vector<1x128xf32>
    %c0_3 = arith.constant 0 : index
    %c0_4 = arith.constant 0 : index
    %2 = vector.load %arg3[%c0_3, %c0_4] : memref<1x128xf32, #tpu.memory_space<vmem>>, vector<1x128xf32>
    %c0_5 = arith.constant 0 : index
    %c0_6 = arith.constant 0 : index
    %3 = vector.load %arg4[%c0_5, %c0_6] : memref<128x32xf32, #tpu.memory_space<vmem>>, vector<128x32xf32>
    %c0_7 = arith.constant 0 : index
    %c0_8 = arith.constant 0 : index
    %4 = vector.load %arg5[%c0_7, %c0_8] : memref<32x128xf32, #tpu.memory_space<vmem>>, vector<32x128xf32>
    %cst = arith.constant dense<0.000000e+00> : vector<16x32xf32>
    %5 = tpu.matmul %0, %3, %cst {dimension_numbers = #tpu.dot_dimension_numbers<[1], [0], [0], [1], [0, 0, 1, 1], [], []>} : vector<16x128xf32>, vector<128x32xf32>, vector<16x32xf32> -> vector<16x32xf32>
    %cst_9 = arith.constant 2.500000e-01 : f32
    %6 = vector.broadcast %cst_9 : f32 to vector<16x32xf32>
    %7 = arith.mulf %5, %6 : vector<16x32xf32>
    %cst_10 = arith.constant dense<0.000000e+00> : vector<16x128xf32>
    %8 = tpu.matmul %7, %4, %cst_10 {dimension_numbers = #tpu.dot_dimension_numbers<[1], [0], [0], [1], [0, 0, 1, 1], [], []>} : vector<16x32xf32>, vector<32x128xf32>, vector<16x128xf32> -> vector<16x128xf32>
    %9 = arith.subf %0, %8 : vector<16x128xf32>
    %10 = arith.mulf %9, %9 : vector<16x128xf32>
    %cst_11 = arith.constant dense<0.000000e+00> : vector<16x32xf32>
    %11 = tpu.matmul %10, %3, %cst_11 {dimension_numbers = #tpu.dot_dimension_numbers<[1], [0], [0], [1], [0, 0, 1, 1], [], []>} : vector<16x128xf32>, vector<128x32xf32>, vector<16x32xf32> -> vector<16x32xf32>
    %cst_12 = arith.constant 2.500000e-01 : f32
    %12 = vector.broadcast %cst_12 : f32 to vector<16x32xf32>
    %13 = arith.mulf %11, %12 : vector<16x32xf32>
    %cst_13 = arith.constant 9.99999997E-7 : f32
    %14 = vector.broadcast %cst_13 : f32 to vector<16x32xf32>
    %15 = arith.addf %13, %14 : vector<16x32xf32>
    %16 = math.rsqrt %15 : vector<16x32xf32>
    %cst_14 = arith.constant dense<0.000000e+00> : vector<16x128xf32>
    %17 = tpu.matmul %16, %4, %cst_14 {dimension_numbers = #tpu.dot_dimension_numbers<[1], [0], [0], [1], [0, 0, 1, 1], [], []>} : vector<16x32xf32>, vector<32x128xf32>, vector<16x128xf32> -> vector<16x128xf32>
    %18 = arith.mulf %9, %17 : vector<16x128xf32>
    %19 = vector.broadcast %1 : vector<1x128xf32> to vector<16x128xf32>
    %20 = arith.mulf %18, %19 : vector<16x128xf32>
    %21 = vector.broadcast %2 : vector<1x128xf32> to vector<16x128xf32>
    %22 = arith.addf %20, %21 : vector<16x128xf32>
    %c0_15 = arith.constant 0 : index
    %c0_16 = arith.constant 0 : index
    %23 = vector.load %arg6[%c0_15, %c0_16] : memref<16x128xf32, #tpu.memory_space<vmem>>, vector<16x128xf32>
    tpu.vector_store %arg6[%c0_15, %c0_16], %22 {strides = array<i32>} : memref<16x128xf32, #tpu.memory_space<vmem>>, vector<16x128xf32>,
    return
  }
  func.func @transform_0(%arg0: i32) -> (i32, i32) {
    %c0_i32 = arith.constant 0 : i32
    %c0_i32_0 = arith.constant 0 : i32
    return %arg0, %c0_i32 : i32, i32
  }
  func.func @transform_1(%arg0: i32) -> (i32, i32) {
    %c0_i32 = arith.constant 0 : i32
    %c0_i32_0 = arith.constant 0 : i32
    %c0_i32_1 = arith.constant 0 : i32
    return %c0_i32, %c0_i32_0 : i32, i32
  }
  func.func @transform_2(%arg0: i32) -> (i32, i32) {
    %c0_i32 = arith.constant 0 : i32
    %c0_i32_0 = arith.constant 0 : i32
    %c0_i32_1 = arith.constant 0 : i32
    return %c0_i32, %c0_i32_0 : i32, i32
  }
  func.func @transform_3(%arg0: i32) -> (i32, i32) {
    %c0_i32 = arith.constant 0 : i32
    %c0_i32_0 = arith.constant 0 : i32
    %c0_i32_1 = arith.constant 0 : i32
    return %c0_i32, %c0_i32_0 : i32, i32
  }
  func.func @transform_4(%arg0: i32) -> (i32, i32) {
    %c0_i32 = arith.constant 0 : i32
    %c0_i32_0 = arith.constant 0 : i32
    %c0_i32_1 = arith.constant 0 : i32
    return %c0_i32, %c0_i32_0 : i32, i32
  }
  func.func @transform_5(%arg0: i32) -> (i32, i32) {
    %c0_i32 = arith.constant 0 : i32
    %c0_i32_0 = arith.constant 0 : i32
    return %arg0, %c0_i32 : i32, i32
  }
}

</mosaic_0001>

<bundles_post_ra>
// kernel: tpu_custom_call.1
= control target key start
LH: loop header
LB: loop body
LE: loop exit
PB: predicated region body
PF: predicated region fallthrough
CT: control target
= control target key end

     0   :  { %s363_s0 = inlined_call_operand.vmem [shape: f32[16,128], index: 0, kind: input, shape index: {}]   ;;  %s364_s1 = inlined_call_operand.vmem [shape: f32[1,128], index: 1, kind: input, shape index: {}]   ;;  %s365_s2 = inlined_call_operand.vmem [shape: f32[1,128], index: 2, kind: input, shape index: {}]   ;;  %s366_s3 = inlined_call_operand.vmem [shape: f32[128,32], index: 3, kind: input, shape index: {}]   ;;  %s367_s4 = inlined_call_operand.vmem [shape: f32[32,128], index: 4, kind: input, shape index: {}]   ;;  %s368_s5 = inlined_call_operand.hbm [shape: f32[16,128], index: 5, kind: output, shape index: {}]  }
   0x1   :  { %v40_v0 = vld [vmem:[%s366_s3 + $0x78] sm:$0xff]  ;;  %v39_v1 = vld [vmem:[%s366_s3 + $0x70] sm:$0xff]  ;;  %v38_v2 = vld [vmem:[%s366_s3 + $0x68] sm:$0xff] }
   0x2   :  { %45 = vmatpush.msra.mxu0 %v40_v0  ;;  %104 = vmatpush.msra.mxu2 %v40_v0  ;;  %v37_v3 = vld [vmem:[%s366_s3 + $0x60] sm:$0xff]  ;;  %v36_v4 = vld [vmem:[%s366_s3 + $0x58] sm:$0xff] }
   0x4   :  { %46 = vmatpush.msra.mxu0 %v39_v1  ;;  %105 = vmatpush.msra.mxu2 %v39_v1 }
   0x6   :  { %47 = vmatpush.msra.mxu0 %v38_v2  ;;  %106 = vmatpush.msra.mxu2 %v38_v2 }
   0x7   :  { %10 = vsyncpa [#allocation3], 0  ;;  %v35_v5 = vld [vmem:[%s366_s3 + $0x50] sm:$0xff]  ;;  %v44_v6 = vld [vmem:[%s367_s4 + $0x18] sm:$0xff]  ;;  %vm70_vm0 = vcmask 261120   ;;  %s251_s13 = smov [#allocation2]  }
   0x8   :  { %48 = vmatpush.msra.mxu0 %v37_v3  ;;  %107 = vmatpush.msra.mxu2 %v37_v3  ;;  %v43_v7 = vld [vmem:[%s367_s4 + $0x10] sm:$0xff]  ;;  %v34_v8 = vld [vmem:[%s366_s3 + $0x48] sm:$0xff]  ;;  %v33_v9 = vld [vmem:[%s366_s3 + $0x40] sm:$0xff]  ;;  %s198_s14 = sshll.u32 %s251_s13, 4  ;;  %s200_s17 = sshll.u32 %s368_s5, 4  ;;  %s199_s14 = int_to_ptr.vmem [resolvable:$true] %s198_s14  ;;  %s201_s17 = int_to_ptr.hbm [resolvable:$true] %s200_s17 }
   0x9   :  { %89 = vmatpush.msra.mxu1 %v44_v6  ;;  %169 = vmatpush.msra.mxu3 %v44_v6  ;;  %v32_v10 = vld [vmem:[%s366_s3 + $0x38] sm:$0xff]  ;;  %v31_v11 = vld [vmem:[%s366_s3 + $0x30] sm:$0xff]  ;;  %v30_v12 = vld [vmem:[%s366_s3 + $0x28] sm:$0xff]  ;;  %s253_s18 = smov 8  }
   0xa   :  { %49 = vmatpush.msra.mxu0 %v36_v4  ;;  %108 = vmatpush.msra.mxu2 %v36_v4  ;;  %v29_v13 = vld [vmem:[%s366_s3 + $0x20] sm:$0xff]  ;;  %v28_v14 = vld [vmem:[%s366_s3 + $0x18] sm:$0xff]  ;;  %v27_v15 = vld [vmem:[%s366_s3 + $0x10] sm:$0xff] }
   0xb   :  { %90 = vmatpush.msra.mxu1 %v43_v7  ;;  %170 = vmatpush.msra.mxu3 %v43_v7  ;;  %v26_v16 = vld [vmem:[%s366_s3 + $0x8] sm:$0xff]  ;;  %v25_v17 = vld [vmem:[%s366_s3] sm:$0xff] }
   0xc   :  { %50 = vmatpush.msra.mxu0 %v35_v5  ;;  %109 = vmatpush.msra.mxu2 %v35_v5  ;;  %v21_v18 = vld [vmem:[%s363_s0] sm:$0xff]  ;;  %v22_v19 = vld [vmem:[%s363_s0 + $0x8] sm:$0xff] }
   0xd   :  { %v42_v20 = vld [vmem:[%s367_s4 + $0x8] sm:$0xff]  ;;  %v41_v21 = vld [vmem:[%s367_s4] sm:$0xff] }
   0xe   :  { %51 = vmatpush.msra.mxu0 %v34_v8  ;;  %110 = vmatpush.msra.mxu2 %v34_v8  ;;  %v219_v52 = vld [vmem:[%s364_s1] ss:$0 sm:$0xff]  ;;  %s252_s1 = smov 128  }
   0xf   :  { %91 = vmatpush.msra.mxu1 %v42_v20  ;;  %171 = vmatpush.msra.mxu3 %v42_v20  ;;  %v220_v55 = vld [vmem:[%s365_s2] ss:$0 sm:$0xff] }
  0x10   :  { %52 = vmatpush.msra.mxu0 %v33_v9  ;;  %111 = vmatpush.msra.mxu2 %v33_v9 }
  0x11   :  { %92 = vmatpush.msra.mxu1 %v41_v21  ;;  %172 = vmatpush.msra.mxu3 %v41_v21 }
  0x12   :  { %53 = vmatpush.msra.mxu0 %v32_v10  ;;  %112 = vmatpush.msra.mxu2 %v32_v10 }
  0x14   :  { %54 = vmatpush.msra.mxu0 %v31_v11  ;;  %113 = vmatpush.msra.mxu2 %v31_v11 }
  0x16   :  { %55 = vmatpush.msra.mxu0 %v30_v12  ;;  %114 = vmatpush.msra.mxu2 %v30_v12 }
  0x18   :  { %56 = vmatpush.msra.mxu0 %v29_v13  ;;  %115 = vmatpush.msra.mxu2 %v29_v13 }
  0x1a   :  { %57 = vmatpush.msra.mxu0 %v28_v14  ;;  %116 = vmatpush.msra.mxu2 %v28_v14 }
  0x1c   :  { %58 = vmatpush.msra.mxu0 %v27_v15  ;;  %117 = vmatpush.msra.mxu2 %v27_v15 }
  0x1e   :  { %59 = vmatpush.msra.mxu0 %v26_v16  ;;  %118 = vmatpush.msra.mxu2 %v26_v16 }
  0x20   :  { %60 = vmatpush.msra.mxu0 %v25_v17  ;;  %119 = vmatpush.msra.mxu2 %v25_v17 }
  0x21   :  { %61 = vmatmul.f32.vlgmr.msra.gmra.mxu0 %v21_v18 }
  0x29   :  { %64 = vmatmul.f32.gmra.mxu0 %v22_v19 }
  0x9e   :  { %v62_v22 = vpop.f32.mrf.mxu0 }
  0x9f   :  { %v68_v23 = vmul.f32 0.25, %v62_v22 }
  0xa1   :  { %212 = vmatmul.msk.f32.vlgmr.msra.gmra.mxu1 %vm70_vm0, %v68_v23 }
  0xa6   :  { %v65_v24 = vpop.f32.mrf.mxu0 }
  0xa7   :  { %v69_v25 = vmul.f32 0.25, %v65_v24 }
  0xa9   :  { %213 = vmatmul.msk.f32.gmra.mxu1 %vm70_vm0, %v69_v25 }
 0x11e   :  { %v94_v26 = vpop.f32.mrf.mxu1 }
 0x11f   :  { %v100_v27 = vsub.f32 %v21_v18, %v94_v26 }
 0x121   :  { %v102_v28 = vmul.f32 %v100_v27, %v100_v27 }
 0x123   :  { %120 = vmatmul.f32.vlgmr.msra.gmra.mxu2 %v102_v28 }
 0x126   :  { %v97_v29 = vpop.f32.mrf.mxu1 }
 0x127   :  { %v101_v30 = vsub.f32 %v22_v19, %v97_v29 }
 0x129   :  { %v103_v31 = vmul.f32 %v101_v30, %v101_v30 }
 0x12b   :  { %123 = vmatmul.f32.gmra.mxu2 %v103_v31 }
 0x1a6   :  { %v121_v32 = vpop.f32.mrf.mxu2 }
 0x1a7   :  { %v127_v33 = vmul.f32 0.25, %v121_v32 }
 0x1a9   :  { %v129_v34 = vadd.f32 1e-06, %v127_v33 }
 0x1ab   :  { %221 = vrsqrt.f32 %v129_v34  ;;  %vm137_vm2 = vweird.f32 %v129_v34 }
 0x1ae   :  { %v124_v35 = vpop.f32.mrf.mxu2 }
 0x1af   :  { %v128_v36 = vmul.f32 0.25, %v124_v35 }
 0x1b1   :  { %v222_v37 = vpop.eup %221  ;;  %v130_v38 = vadd.f32 1e-06, %v128_v36 }
 0x1b2   :  { %v132_v39 = vmul.f32 %v222_v37, %v129_v34  ;;  %vm138_vm1 = vweird.f32 %v222_v37 }
 0x1b3   :  { %223 = vrsqrt.f32 %v130_v38  ;;  %vm139_vm3 = vmor %vm137_vm2, %vm138_vm1  ;;  %vm147_vm5 = vweird.f32 %v130_v38 }
 0x1b4   :  { %v133_v40 = vmul.f32 %v222_v37, %v132_v39 }
 0x1b6   :  { %v134_v41 = vmul.f32 0.5, %v133_v40 }
 0x1b8   :  { %v135_v42 = vsub.f32 1.5, %v134_v41 }
 0x1b9   :  { %v224_v43 = vpop.eup %223 }
 0x1ba   :  { %v142_v44 = vmul.f32 %v224_v43, %v130_v38  ;;  %v136_v45 = vmul.f32 %v222_v37, %v135_v42  ;;  %vm148_vm4 = vweird.f32 %v224_v43 }
 0x1bb   :  { %vm149_vm6 = vmor %vm147_vm5, %vm148_vm4 }
 0x1bc   :  { %v143_v46 = vmul.f32 %v224_v43, %v142_v44  ;;  %v140_v47 = vsel %vm139_vm3, %v222_v37, %v136_v45 }
 0x1bd   :  { %214 = vmatmul.msk.f32.vlgmr.msra.gmra.mxu3 %vm70_vm0, %v140_v47 }
 0x1be   :  { %v144_v48 = vmul.f32 0.5, %v143_v46 }
 0x1c0   :  { %v145_v49 = vsub.f32 1.5, %v144_v48 }
 0x1c2   :  { %v146_v50 = vmul.f32 %v224_v43, %v145_v49 }
 0x1c4   :  { %v150_v51 = vsel %vm149_vm6, %v224_v43, %v146_v50 }
 0x1c5   :  { %215 = vmatmul.msk.f32.gmra.mxu3 %vm70_vm0, %v150_v51 }
 0x240   :  { %v174_v53 = vpop.f32.mrf.mxu3 }
 0x241   :  { %v180_v54 = vmul.f32 %v174_v53, %v100_v27 }
 0x243   :  { %v185_v56 = vmul.f32 %v219_v52, %v180_v54 }
 0x245   :  { %v190_v57 = vadd.f32 %v220_v55, %v185_v56 }
 0x247   :  { %192 = vst [vmem:[#allocation2] sm:$0xff] %v190_v57 }
 0x248   :  { %v177_v58 = vpop.f32.mrf.mxu3 }
 0x249   :  { %v181_v59 = vmul.f32 %v177_v58, %v101_v30 }
 0x24b   :  { %v186_v60 = vmul.f32 %v219_v52, %v181_v59 }
 0x24d   :  { %v191_v61 = vadd.f32 %v220_v55, %v186_v60 }
 0x24f   :  { %193 = vst [vmem:[#allocation2 + $0x8] sm:$0xff] %v191_v61 }
 0x250   :  { %206 = dma.vmem_to_hbm [thread:$0]  %s199_s14, 256, %s201_s17, [#allocation3], %s252_s1, %s252_s1, %s253_s18  }
 0x251   :  { %249 = dma.done.wait [#allocation3], 256  }
 0x252   :  { %250 = vsyncadd [#allocation3], 4294967040 }
 0x253   :  { %211 = vsyncpa [#allocation3], 1 }

</bundles_post_ra>
